<compile_context>
chip_gen: v7x
topology: tpu7x:2x2x1
jax: 0.10.0
libtpu: 0.0.40
codegen_flags: <defaults>
</compile_context>

<pallas_src>
import functools

import jax
import jax.numpy as jnp
from jax.experimental import pallas as pl
from jax.experimental.pallas import tpu as pltpu


def _round_up(a, m):
    return ((a + m - 1) // m) * m


def _choose_tile(n, tile_n):
    """Batch-tile size: multiple of 8, <= tile_n, and >= 2 grid steps when
    possible (so v7x megacore gets both TensorCores busy)."""
    n = max(int(n), 1)
    if n < 16:
        return _round_up(n, 8)
    half = _round_up(-(-n // 2), 8)      # ceil(n/2) rounded up to 8
    return min(tile_n, half)


def mlp_kernel(x_ref, w1_ref, b1_ref, w2_ref, b2_ref, w3_ref, b3_ref, o_ref):
    x = x_ref[...]                                                     # (tn, 13)

    h1 = jnp.dot(x, w1_ref[...], preferred_element_type=jnp.float32) + b1_ref[...]
    h1 = jnp.maximum(h1, 0.0)                                          # relu, (tn, 50)

    h2 = jnp.dot(h1, w2_ref[...], preferred_element_type=jnp.float32) + b2_ref[...]
    # sigmoid(h2) == 0.5 * (tanh(h2/2) + 1): a single EUP transcendental per
    # element (vs exp + reciprocal), exact w.r.t. torch.sigmoid semantics,
    # and f32 throughout so it lowers on v5e (no bf16 EUP/VPU) as well.
    s = 0.5 * jnp.tanh(0.5 * h2) + 0.5                                 # (tn, 250)

    o = jnp.dot(s, w3_ref[...], preferred_element_type=jnp.float32) + b3_ref[...]
    o_ref[...] = o.astype(o_ref.dtype)                                 # (tn, 4)


@functools.partial(jax.jit, static_argnames=("tile_n",))
def network_1_forward(x, params, *, tile_n=2048):
    """Pallas forward pass. x: (N, 13) f32 -> (N, 4) f32."""
    w1, b1, w2, b2, w3, b3 = params
    N = x.shape[0]

    tn = _choose_tile(N, tile_n)
    grid = (pl.cdiv(N, tn),)

    # Weights/biases: whole array resident in VMEM, same block every grid step.
    resident = lambda a: pl.BlockSpec(a.shape, lambda i: (0,) * a.ndim)

    out = pl.pallas_call(
        mlp_kernel,
        out_shape=jax.ShapeDtypeStruct((N, 4), jnp.float32),
        grid=grid,
        in_specs=[
            pl.BlockSpec((tn, 13), lambda i: (i, 0)),   # x streams per batch tile
            resident(w1), resident(b1),
            resident(w2), resident(b2),
            resident(w3), resident(b3),
        ],
        out_specs=pl.BlockSpec((tn, 4), lambda i: (i, 0)),
        compiler_params=pltpu.CompilerParams(
            dimension_semantics=("parallel",),          # megacore sharding on v7x
            vmem_limit_bytes=32 * 1024 * 1024,          # safe on v5e/v6e/v7x
        ),
    )(x, w1, b1, w2, b2, w3, b3)

    return out


def network_1_forward_ref(x, params):
    """Plain-JAX reference (also the preferred path for tiny batches, where a
    Pallas call is pure launch overhead)."""
    w1, b1, w2, b2, w3, b3 = params
    h = jnp.maximum(x @ w1 + b1, 0.0)
    h = jax.nn.sigmoid(h @ w2 + b2)
    return h @ w3 + b3


def init_params(key):
    # Deterministic init mimicking torch.nn.Linear default:
    # U(-1/sqrt(fan_in), 1/sqrt(fan_in)) for both weight and bias.
    def linear(key, fan_in, fan_out):
        kw, kb = jax.random.split(key)
        bound = 1.0 / jnp.sqrt(fan_in)
        w = jax.random.uniform(kw, (fan_in, fan_out), jnp.float32, -bound, bound)
        b = jax.random.uniform(kb, (1, fan_out), jnp.float32, -bound, bound)
        return w, b

    k1, k2, k3 = jax.random.split(key, 3)
    w1, b1 = linear(k1, 13, 50)
    w2, b2 = linear(k2, 50, 250)
    w3, b3 = linear(k3, 250, 4)
    return (w1, b1, w2, b2, w3, b3)


if __name__ == "__main__":
    key = jax.random.PRNGKey(0)
    k_params, k_x = jax.random.split(key)

    params = init_params(k_params)

    # small batch consistent with the module (8 rows, 13 features)
    x = jax.random.normal(k_x, (8, 13), jnp.float32)
    out = jax.block_until_ready(network_1_forward(x, params))
    ref = network_1_forward_ref(x, params)
    assert out.shape == (8, 4)
    assert jnp.allclose(out, ref, atol=1e-2, rtol=1e-2), float(
        jnp.max(jnp.abs(out - ref))
    )

    # ragged batch: exercises the >=2-step grid (v7x megacore) and the masked
    # partial last block (no wrapper-side pad / slice).
    x_big = jax.random.normal(jax.random.PRNGKey(1), (100, 13), jnp.float32)
    out_big = jax.block_until_ready(network_1_forward(x_big, params))
    ref_big = network_1_forward_ref(x_big, params)
    assert out_big.shape == (100, 4)
    assert jnp.allclose(out_big, ref_big, atol=1e-2, rtol=1e-2), float(
        jnp.max(jnp.abs(out_big - ref_big))
    )

    print("KERNEL_OK")
</pallas_src>

<mosaic_0001>
module attributes {stable_mosaic.version = 11 : i64} {
  func.func @mlp_kernel(%arg0: i32, %arg1: memref<8x13xf32, #tpu.memory_space<vmem>>, %arg2: memref<13x50xf32, #tpu.memory_space<vmem>>, %arg3: memref<1x50xf32, #tpu.memory_space<vmem>>, %arg4: memref<50x250xf32, #tpu.memory_space<vmem>>, %arg5: memref<1x250xf32, #tpu.memory_space<vmem>>, %arg6: memref<250x4xf32, #tpu.memory_space<vmem>>, %arg7: memref<1x4xf32, #tpu.memory_space<vmem>>, %arg8: memref<8x4xf32, #tpu.memory_space<vmem>>) attributes {dimension_semantics = [#tpu.dimension_semantics<parallel>], iteration_bounds = array<i64: 1>, scalar_prefetch = 0 : i64, scratch_operands = 0 : i64, tpu.core_type = #tpu.core_type<tc>, window_params = [{transform_indices = @transform_0, window_bounds = array<i64: 8, 13>}, {pipeline_mode = #tpu.pipeline_mode<synchronous>, transform_indices = @transform_1, window_bounds = array<i64: 13, 50>}, {pipeline_mode = #tpu.pipeline_mode<synchronous>, transform_indices = @transform_2, window_bounds = array<i64: 1, 50>}, {pipeline_mode = #tpu.pipeline_mode<synchronous>, transform_indices = @transform_3, window_bounds = array<i64: 50, 250>}, {pipeline_mode = #tpu.pipeline_mode<synchronous>, transform_indices = @transform_4, window_bounds = array<i64: 1, 250>}, {pipeline_mode = #tpu.pipeline_mode<synchronous>, transform_indices = @transform_5, window_bounds = array<i64: 250, 4>}, {pipeline_mode = #tpu.pipeline_mode<synchronous>, transform_indices = @transform_6, window_bounds = array<i64: 1, 4>}, {transform_indices = @transform_7, window_bounds = array<i64: 8, 4>}]} {
    %c0 = arith.constant 0 : index
    %c0_0 = arith.constant 0 : index
    %0 = vector.load %arg1[%c0, %c0_0] : memref<8x13xf32, #tpu.memory_space<vmem>>, vector<8x13xf32>
    %c0_1 = arith.constant 0 : index
    %c0_2 = arith.constant 0 : index
    %1 = vector.load %arg2[%c0_1, %c0_2] : memref<13x50xf32, #tpu.memory_space<vmem>>, vector<13x50xf32>
    %cst = arith.constant dense<0.000000e+00> : vector<8x50xf32>
    %2 = tpu.matmul %0, %1, %cst {dimension_numbers = #tpu.dot_dimension_numbers<[1], [0], [0], [1], [0, 0, 1, 1], [], []>} : vector<8x13xf32>, vector<13x50xf32>, vector<8x50xf32> -> vector<8x50xf32>
    %c0_3 = arith.constant 0 : index
    %c0_4 = arith.constant 0 : index
    %3 = vector.load %arg3[%c0_3, %c0_4] : memref<1x50xf32, #tpu.memory_space<vmem>>, vector<1x50xf32>
    %4 = vector.broadcast %3 : vector<1x50xf32> to vector<8x50xf32>
    %5 = arith.addf %2, %4 : vector<8x50xf32>
    %cst_5 = arith.constant 0.000000e+00 : f32
    %6 = vector.broadcast %cst_5 : f32 to vector<8x50xf32>
    %7 = arith.maximumf %5, %6 : vector<8x50xf32>
    %c0_6 = arith.constant 0 : index
    %c0_7 = arith.constant 0 : index
    %8 = vector.load %arg4[%c0_6, %c0_7] : memref<50x250xf32, #tpu.memory_space<vmem>>, vector<50x250xf32>
    %cst_8 = arith.constant dense<0.000000e+00> : vector<8x250xf32>
    %9 = tpu.matmul %7, %8, %cst_8 {dimension_numbers = #tpu.dot_dimension_numbers<[1], [0], [0], [1], [0, 0, 1, 1], [], []>} : vector<8x50xf32>, vector<50x250xf32>, vector<8x250xf32> -> vector<8x250xf32>
    %c0_9 = arith.constant 0 : index
    %c0_10 = arith.constant 0 : index
    %10 = vector.load %arg5[%c0_9, %c0_10] : memref<1x250xf32, #tpu.memory_space<vmem>>, vector<1x250xf32>
    %11 = vector.broadcast %10 : vector<1x250xf32> to vector<8x250xf32>
    %12 = arith.addf %9, %11 : vector<8x250xf32>
    %cst_11 = arith.constant 5.000000e-01 : f32
    %13 = vector.broadcast %cst_11 : f32 to vector<8x250xf32>
    %14 = arith.mulf %13, %12 : vector<8x250xf32>
    %15 = math.tanh %14 : vector<8x250xf32>
    %cst_12 = arith.constant 5.000000e-01 : f32
    %16 = vector.broadcast %cst_12 : f32 to vector<8x250xf32>
    %17 = arith.mulf %16, %15 : vector<8x250xf32>
    %cst_13 = arith.constant 5.000000e-01 : f32
    %18 = vector.broadcast %cst_13 : f32 to vector<8x250xf32>
    %19 = arith.addf %17, %18 : vector<8x250xf32>
    %c0_14 = arith.constant 0 : index
    %c0_15 = arith.constant 0 : index
    %20 = vector.load %arg6[%c0_14, %c0_15] : memref<250x4xf32, #tpu.memory_space<vmem>>, vector<250x4xf32>
    %cst_16 = arith.constant dense<0.000000e+00> : vector<8x4xf32>
    %21 = tpu.matmul %19, %20, %cst_16 {dimension_numbers = #tpu.dot_dimension_numbers<[1], [0], [0], [1], [0, 0, 1, 1], [], []>} : vector<8x250xf32>, vector<250x4xf32>, vector<8x4xf32> -> vector<8x4xf32>
    %c0_17 = arith.constant 0 : index
    %c0_18 = arith.constant 0 : index
    %22 = vector.load %arg7[%c0_17, %c0_18] : memref<1x4xf32, #tpu.memory_space<vmem>>, vector<1x4xf32>
    %23 = vector.broadcast %22 : vector<1x4xf32> to vector<8x4xf32>
    %24 = arith.addf %21, %23 : vector<8x4xf32>
    %c0_19 = arith.constant 0 : index
    %c0_20 = arith.constant 0 : index
    %25 = vector.load %arg8[%c0_19, %c0_20] : memref<8x4xf32, #tpu.memory_space<vmem>>, vector<8x4xf32>
    tpu.vector_store %arg8[%c0_19, %c0_20], %24 {strides = array<i32>} : memref<8x4xf32, #tpu.memory_space<vmem>>, vector<8x4xf32>,
    return
  }
  func.func @transform_0(%arg0: i32) -> (i32, i32) {
    %c0_i32 = arith.constant 0 : i32
    %c0_i32_0 = arith.constant 0 : i32
    return %arg0, %c0_i32 : i32, i32
  }
  func.func @transform_1(%arg0: i32) -> (i32, i32) {
    %c0_i32 = arith.constant 0 : i32
    %c0_i32_0 = arith.constant 0 : i32
    %c0_i32_1 = arith.constant 0 : i32
    return %c0_i32, %c0_i32_0 : i32, i32
  }
  func.func @transform_2(%arg0: i32) -> (i32, i32) {
    %c0_i32 = arith.constant 0 : i32
    %c0_i32_0 = arith.constant 0 : i32
    %c0_i32_1 = arith.constant 0 : i32
    return %c0_i32, %c0_i32_0 : i32, i32
  }
  func.func @transform_3(%arg0: i32) -> (i32, i32) {
    %c0_i32 = arith.constant 0 : i32
    %c0_i32_0 = arith.constant 0 : i32
    %c0_i32_1 = arith.constant 0 : i32
    return %c0_i32, %c0_i32_0 : i32, i32
  }
  func.func @transform_4(%arg0: i32) -> (i32, i32) {
    %c0_i32 = arith.constant 0 : i32
    %c0_i32_0 = arith.constant 0 : i32
    %c0_i32_1 = arith.constant 0 : i32
    return %c0_i32, %c0_i32_0 : i32, i32
  }
  func.func @transform_5(%arg0: i32) -> (i32, i32) {
    %c0_i32 = arith.constant 0 : i32
    %c0_i32_0 = arith.constant 0 : i32
    %c0_i32_1 = arith.constant 0 : i32
    return %c0_i32, %c0_i32_0 : i32, i32
  }
  func.func @transform_6(%arg0: i32) -> (i32, i32) {
    %c0_i32 = arith.constant 0 : i32
    %c0_i32_0 = arith.constant 0 : i32
    %c0_i32_1 = arith.constant 0 : i32
    return %c0_i32, %c0_i32_0 : i32, i32
  }
  func.func @transform_7(%arg0: i32) -> (i32, i32) {
    %c0_i32 = arith.constant 0 : i32
    %c0_i32_0 = arith.constant 0 : i32
    return %arg0, %c0_i32 : i32, i32
  }
}

</mosaic_0001>

<bundles_post_ra>
// kernel: network_1_forward.1
= control target key start
LH: loop header
LB: loop body
LE: loop exit
PB: predicated region body
PF: predicated region fallthrough
CT: control target
= control target key end

     0   :  { %vm40_vm0 = vcmask 1044480   ;;  %v464_v0 = vmov 0.0|0.0   ;;  %vm465_vm1 = vmmov 1   ;;  %vm466_vm3 = vmmov 0   ;;  %s672_s1 = inlined_call_operand.vmem [shape: f32[13,50], index: 1, kind: input, shape index: {}]   ;;  %s673_s3 = inlined_call_operand.vmem [shape: f32[50,250], index: 3, kind: input, shape index: {}]   ;;  %s674_s0 = inlined_call_operand.vmem [shape: f32[8,13], index: 0, kind: input, shape index: {}]   ;;  %s675_s5 = inlined_call_operand.vmem [shape: f32[250,4], index: 5, kind: input, shape index: {}]   ;;  %s676_s2 = inlined_call_operand.vmem [shape: f32[1,50], index: 2, kind: input, shape index: {}]   ;;  %s677_s4 = inlined_call_operand.vmem [shape: f32[1,250], index: 4, kind: input, shape index: {}]   ;;  %s678_s6 = inlined_call_operand.vmem [shape: f32[1,4], index: 6, kind: input, shape index: {}]   ;;  %s679_s7 = inlined_call_operand.vmem [shape: f32[8,4], index: 7, kind: output, shape index: {}]  }
   0x1   :  { %407 = vmatprep.subr.bf16.mxu1 %v464_v0  ;;  %v27_v1 = vld [vmem:[%s672_s1] sm:$0xff]  ;;  %v28_v2 = vld [vmem:[%s672_s1 + $0x8] sm:$0x1f]  ;;  %vm409_vm2 = vmpackc.low %vm40_vm0, %vm465_vm1  ;;  %v467_v4 = vmov 0.0   ;;  %vm36_vm4 = vcmask 105472   ;;  %vm145_vm5 = vcmask 1041408  }
   0x2   :  { %v408_v3 = vpack.c.bf16 %v28_v2, %v27_v1  ;;  %404 = vmatprep.mubr.msk.f32.mxu1 %vm466_vm3, %v467_v4  ;;  %v116_v5 = vld [vmem:[%s673_s3 + $0x8] sm:$0xff]  ;;  %v118_v6 = vld [vmem:[%s673_s3 + $0x18] sm:$0xff]  ;;  %v115_v8 = vld [vmem:[%s673_s3] sm:$0xff]  ;;  %vm141_vm6 = vcmask 408576   ;;  %vm270_vm8 = vcmask 998400   ;;  %vm347_vm9 = vcmask 31744  }
   0x3   :  { %v411_v7 = vpack.c.bf16 %v118_v6, %v116_v5  ;;  %v117_v9 = vld [vmem:[%s673_s3 + $0x10] sm:$0xff]  ;;  %v120_v10 = vld [vmem:[%s673_s3 + $0x28] sm:$0xff]  ;;  %v26_v11 = vld [vmem:[%s674_s0] sm:$0xff] }
   0x4   :  { %410 = vmatpush3.bf16.msk.msra.mxu1 %vm409_vm2, %v408_v3  ;;  %v413_v12 = vpack.c.bf16 %v117_v9, %v115_v8  ;;  %v122_v13 = vld [vmem:[%s673_s3 + $0x38] sm:$0xff]  ;;  %v119_v15 = vld [vmem:[%s673_s3 + $0x20] sm:$0xff]  ;;  %v121_v16 = vld [vmem:[%s673_s3 + $0x30] sm:$0xff] }
   0x5   :  { %412 = vmatprep.subr.bf16.mxu1 %v411_v7  ;;  %v415_v14 = vpack.c.bf16 %v122_v13, %v120_v10  ;;  %v124_v17 = vld [vmem:[%s673_s3 + $0x48] sm:$0xff]  ;;  %v126_v18 = vld [vmem:[%s673_s3 + $0x58] sm:$0xff]  ;;  %v417_v19 = vpack.c.bf16 %v121_v16, %v119_v15  ;;  %v123_v21 = vld [vmem:[%s673_s3 + $0x40] sm:$0xff]  ;;  %v131_v15 = vlaneseq }
   0x6   :  { %v419_v20 = vpack.c.bf16 %v126_v18, %v124_v17  ;;  %v125_v22 = vld [vmem:[%s673_s3 + $0x50] sm:$0xff]  ;;  %v128_v24 = vld [vmem:[%s673_s3 + $0x68] sm:$0x3]  ;;  %v127_v25 = vld [vmem:[%s673_s3 + $0x60] sm:$0x3] }
   0x7   :  { %405 = vmatmul.mubr.msk.f32.vlgmr.msra.gmra.mrb[0].mxu1 %vm36_vm4, %v26_v11  ;;  %v421_v23 = vpack.c.bf16 %v125_v22, %v123_v21  ;;  %v247_v26 = vld [vmem:[%s675_s5 + $0x80] sm:$0xff]  ;;  %v248_v27 = vld [vmem:[%s675_s5 + $0x88] sm:$0xff]  ;;  %v249_v31 = vld [vmem:[%s675_s5 + $0x90] sm:$0xff]  ;;  %v132_v16 = vshrl.u32 %v131_v15, 7 }
   0x8   :  { %414 = vmatpush1.bf16.msra.mxu1 %v413_v12  ;;  %216 = vmatprep.mubr.f32.mxu1 %v467_v4  ;;  %v231_v28 = vld [vmem:[%s675_s5] sm:$0xff]  ;;  %v423_v29 = vpack.c.bf16 %v248_v27, %v247_v26  ;;  %v232_v30 = vld [vmem:[%s675_s5 + $0x8] sm:$0xff]  ;;  %v250_v32 = vld [vmem:[%s675_s5 + $0x98] sm:$0xff] }
   0x9   :  { %416 = vmatprep.subr.bf16.mxu1 %v415_v14  ;;  %v425_v33 = vpack.c.bf16 %v232_v30, %v231_v28  ;;  %v427_v34 = vpack.c.bf16 %v250_v32, %v249_v31  ;;  %v233_v35 = vld [vmem:[%s675_s5 + $0x10] sm:$0xff]  ;;  %v234_v36 = vld [vmem:[%s675_s5 + $0x18] sm:$0xff]  ;;  %v251_v37 = vld [vmem:[%s675_s5 + $0xa0] sm:$0xff]  ;;  %v133_v17 = vsub.s32 0, %v132_v16 }
   0xa   :  { %424 = vmatprep.subr.bf16.mxu0 %v423_v29  ;;  %v252_v38 = vld [vmem:[%s675_s5 + $0xa8] sm:$0xff]  ;;  %v429_v39 = vpack.c.bf16 %v234_v36, %v233_v35  ;;  %v235_v41 = vld [vmem:[%s675_s5 + $0x20] sm:$0xff]  ;;  %v253_v49 = vld [vmem:[%s675_s5 + $0xb0] sm:$0xff] }
   0xb   :  { %426 = vmatpush3.bf16.msra.mxu0 %v425_v33  ;;  %v431_v40 = vpack.c.bf16 %v252_v38, %v251_v37  ;;  %v236_v42 = vld [vmem:[%s675_s5 + $0x28] sm:$0xff]  ;;  %v353_v44 = vld [vmem:[%s676_s2] ss:$0 sm:$0xff]  ;;  %v254_v50 = vld [vmem:[%s675_s5 + $0xb8] sm:$0xff] }
   0xc   :  { %418 = vmatpush1.bf16.msra.mxu1 %v417_v19  ;;  %428 = vmatprep.subr.bf16.mxu0 %v427_v34  ;;  %v433_v43 = vpack.c.bf16 %v236_v42, %v235_v41  ;;  %v435_v51 = vpack.c.bf16 %v254_v50, %v253_v49  ;;  %v237_v52 = vld [vmem:[%s675_s5 + $0x30] sm:$0xff]  ;;  %v238_v53 = vld [vmem:[%s675_s5 + $0x38] sm:$0xff]  ;;  %v255_v55 = vld [vmem:[%s675_s5 + $0xc0] sm:$0xff]  ;;  %v137_v19 = vsub.s32 1, %v132_v16 }
   0xd   :  { %420 = vmatprep.subr.bf16.mxu1 %v419_v20  ;;  %v437_v54 = vpack.c.bf16 %v238_v53, %v237_v52  ;;  %v256_v56 = vld [vmem:[%s675_s5 + $0xc8] sm:$0xff]  ;;  %v239_v58 = vld [vmem:[%s675_s5 + $0x40] sm:$0xff]  ;;  %v257_v61 = vld [vmem:[%s675_s5 + $0xd0] sm:$0xff] }
   0xe   :  { %v439_v57 = vpack.c.bf16 %v256_v56, %v255_v55  ;;  %v240_v59 = vld [vmem:[%s675_s5 + $0x48] sm:$0xff]  ;;  %v258_v62 = vld [vmem:[%s675_s5 + $0xd8] sm:$0xff]  ;;  %v241_v0 = vld [vmem:[%s675_s5 + $0x50] sm:$0xff] }
   0xf   :  { %430 = vmatpush3.bf16.msra.mxu0 %v429_v39  ;;  %v441_v60 = vpack.c.bf16 %v240_v59, %v239_v58  ;;  %v443_v63 = vpack.c.bf16 %v258_v62, %v257_v61  ;;  %v242_v1 = vld [vmem:[%s675_s5 + $0x58] sm:$0xff]  ;;  %v259_v3 = vld [vmem:[%s675_s5 + $0xe0] sm:$0xff]  ;;  %v260_v4 = vld [vmem:[%s675_s5 + $0xe8] sm:$0xff] }
  0x10   :  { %422 = vmatpush1.bf16.msra.mxu1 %v421_v23  ;;  %432 = vmatprep.subr.bf16.mxu0 %v431_v40  ;;  %v445_v2 = vpack.c.bf16 %v242_v1, %v241_v0  ;;  %v447_v5 = vpack.c.bf16 %v260_v4, %v259_v3  ;;  %v243_v6 = vld [vmem:[%s675_s5 + $0x60] sm:$0xff]  ;;  %v244_v7 = vld [vmem:[%s675_s5 + $0x68] sm:$0xff]  ;;  %v261_v9 = vld [vmem:[%s675_s5 + $0xf0] sm:$0xff] }
  0x11   :  { %356 = vmatprep.subr.msk.mxu1 %vm145_vm5, %v128_v24  ;;  %v449_v8 = vpack.c.bf16 %v244_v7, %v243_v6  ;;  %v262_v10 = vld [vmem:[%s675_s5 + $0xf8] sm:$0x3]  ;;  %vm452_vm7 = vmpackc.low %vm145_vm5, %vm465_vm1  ;;  %v245_v12 = vld [vmem:[%s675_s5 + $0x70] sm:$0xff] }
  0x12   :  { %v451_v11 = vpack.c.bf16 %v262_v10, %v261_v9  ;;  %v246_v13 = vld [vmem:[%s675_s5 + $0x78] sm:$0xff]  ;;  %v129_v18 = vld [vmem:[%s677_s4] sm:$0x3] }
  0x13   :  { %434 = vmatpush3.bf16.msra.mxu0 %v433_v43  ;;  %v454_v14 = vpack.c.bf16 %v246_v13, %v245_v12  ;;  %v134_v20 = vrot.slane %v129_v18, %v133_v17  ;;  %v138_v21 = vrot.slane %v129_v18, %v137_v19  ;;  %v359_v35 = vld [vmem:[%s678_s6] ss:$0 sm:$0xff] }
  0x14   :  { %357 = vmatpush1.msk.msra.mxu1 %vm145_vm5, %v127_v25  ;;  %436 = vmatprep.subr.bf16.mxu0 %v435_v51 }
  0x17   :  { %438 = vmatpush3.bf16.msra.mxu0 %v437_v54 }
  0x18   :  { %440 = vmatprep.subr.bf16.mxu0 %v439_v57 }
  0x1b   :  { %442 = vmatpush3.bf16.msra.mxu0 %v441_v60 }
  0x1c   :  { %444 = vmatprep.subr.bf16.mxu0 %v443_v63 }
  0x1f   :  { %446 = vmatpush3.bf16.msra.mxu0 %v445_v2 }
  0x20   :  { %448 = vmatprep.subr.bf16.mxu0 %v447_v5 }
  0x23   :  { %450 = vmatpush3.bf16.msra.mxu0 %v449_v8 }
  0x24   :  { %453 = vmatprep.subr.msk.bf16.mxu0 %vm452_vm7, %v451_v11 }
  0x27   :  { %455 = vmatpush3.bf16.msra.mxu0 %v454_v14 }
  0xda   :  { %v110_v45 = vpop.f32.mrb[0].mxu1 }
  0xdb   :  { %v111_v46 = vadd.f32 %v353_v44, %v110_v45  ;;  %v406_v47 = vpop.f32.mrb[1].mxu1 }
  0xdd   :  { %v114_v48 = vmax.f32 %v111_v46, 0.0 }
  0xdf   :  { %358 = vmatmul.mubr.msk.f32.vlgmr.msra.gmra.mrb[2].mxu1 %vm141_vm6, %v114_v48 }
 0x1b2   :  { %v218_v22 = vpop.f32.mrb[2].mxu1 }
 0x1b3   :  { %v219_v23 = vadd.f32 %v218_v22, %v134_v20  ;;  %v220_v24 = vpop.f32.mrb[3].mxu1 }
 0x1b4   :  { %v221_v25 = vadd.f32 %v220_v24, %v138_v21 }
 0x1b5   :  { %v223_v26 = vmul.f32 0.5, %v219_v23 }
 0x1b6   :  { %v224_v27 = vmul.f32 0.5, %v221_v25 }
 0x1b7   :  { %460 = vtanh.f32 %v223_v26 }
 0x1b8   :  { %462 = vtanh.f32 %v224_v27 }
 0x1c1   :  { %v461_v28 = vpop.eup %460 }
 0x1c2   :  { %v463_v29 = vpop.eup %462  ;;  %v227_v30 = vmul.f32 0.5, %v461_v28 }
 0x1c3   :  { %v228_v31 = vmul.f32 0.5, %v463_v29 }
 0x1c4   :  { %v229_v33 = vadd.f32 0.5, %v227_v30 }
 0x1c5   :  { %v230_v32 = vadd.f32 0.5, %v228_v31 }
 0x1c7   :  { %361 = vmatprep.mubr.msk.f32.mxu0 %vm270_vm8, %v230_v32 }
 0x1c8   :  { %342 = vmatmul.mubr.f32.vlgmr.msra.gmra.mrb[0].mxu0 %v229_v33 }
 0x29b   :  { %v397_v34 = vpop.f32.mrb[0].mxu0 }
 0x29c   :  { %v398_v36 = vpop.f32.mrb[1].mxu0 }
 0x29d   :  { %v399_v37 = vadd.f32 %v398_v36, %v397_v34 }
 0x29f   :  { %v344_v38 = vadd.f32 %v399_v37, %v359_v35 }
 0x2a1   :  { %348 = vst.msk [vmem:[%s679_s7] sm:$0xff] %vm347_vm9, %v344_v38 }

</bundles_post_ra>
